<compile_context>
chip_gen: v6e
topology: v6e:2x2x1
jax: 0.10.0
libtpu: 0.0.40
codegen_flags: <defaults>
</compile_context>

<pallas_src>
import functools

import jax
import jax.numpy as jnp
from jax.experimental import pallas as pl
from jax.experimental.pallas import tpu as pltpu


def _simam_kernel(x_ref, o_ref, *, e_lambda: float, hw: int, n: int):
    # x_ref: (row_tile, H*W) block in VMEM.
    x = x_ref[...].astype(jnp.float32)

    # Fused row reductions: one pass over x for both sums.
    sx = jnp.sum(x, axis=-1, keepdims=True)          # sum(x)        (row_tile, 1)
    sxx = jnp.sum(x * x, axis=-1, keepdims=True)     # sum(x^2)      (row_tile, 1)

    mu = sx * jnp.float32(1.0 / hw)                  # per-row spatial mean
    s = sxx - sx * mu                                # = sum((x - mu)^2)

    # denom = 4 * (s / n + e_lambda), constants folded.
    denom = s * jnp.float32(4.0 / n) + jnp.float32(4.0 * e_lambda)
    inv_denom = pl.reciprocal(denom, approx=False)   # exact; only (row_tile, 1)

    xm = x - mu
    d = xm * xm
    y = d * inv_denom + jnp.float32(0.5)

    out = x * jax.nn.sigmoid(y)
    o_ref[...] = out.astype(o_ref.dtype)


def _choose_row_tile(rows: int, hw: int, itemsize: int) -> int:
    """Row tile: sublane-aligned, sized so double-buffered in+out fits VMEM."""
    # Sublane packing granularity: 8 rows for 32-bit, 16 for 16-bit dtypes.
    sub = 8 if itemsize >= 4 else 16

    # Per row of block: input + output, each double-buffered by the pipeline.
    per_row_bytes = 2 * 2 * hw * itemsize
    # Conservative budget so the same tile fits v5e/v6e/v7x scoped VMEM.
    budget_bytes = 16 * 1024 * 1024

    max_rows = max(sub, (budget_bytes // per_row_bytes) // sub * sub)
    row_tile = min(max_rows, 1024)

    # Never exceed the (sublane-padded) number of rows.
    rows_padded = -(-rows // sub) * sub
    row_tile = min(row_tile, rows_padded)
    row_tile = max(sub, (row_tile // sub) * sub)
    return row_tile


def simam(x: jax.Array, e_lambda: float = 1e-4) -> jax.Array:
    """SimAM forward. x is NCHW, returns NCHW of the same dtype."""
    b, c, h, w = x.shape
    hw = h * w
    n = hw - 1
    rows = b * c

    x2d = x.reshape(rows, hw)
    itemsize = jnp.dtype(x.dtype).itemsize
    row_tile = _choose_row_tile(rows, hw, itemsize)

    kernel = functools.partial(_simam_kernel, e_lambda=e_lambda, hw=hw, n=n)

    # Memory-bound cost hint for the XLA scheduler.
    cost = pl.CostEstimate(
        flops=10 * rows * hw,
        transcendentals=rows * hw,          # sigmoid
        bytes_accessed=2 * rows * hw * itemsize,
    )

    out2d = pl.pallas_call(
        kernel,
        out_shape=jax.ShapeDtypeStruct((rows, hw), x.dtype),
        grid_spec=pltpu.PrefetchScalarGridSpec(
            num_scalar_prefetch=0,
            grid=(pl.cdiv(rows, row_tile),),
            in_specs=[pl.BlockSpec((row_tile, hw), lambda i: (i, 0))],
            out_specs=pl.BlockSpec((row_tile, hw), lambda i: (i, 0)),
        ),
        compiler_params=pltpu.CompilerParams(
            dimension_semantics=("parallel",),
            vmem_limit_bytes=32 * 1024 * 1024,
        ),
        cost_estimate=cost,
    )(x2d)

    return out2d.reshape(b, c, h, w)


def _simam_ref(x: jax.Array, e_lambda: float = 1e-4) -> jax.Array:
    """Pure-JAX reference mirroring the PyTorch forward."""
    b, c, h, w = x.shape
    n = h * w - 1
    mu = jnp.mean(x, axis=(2, 3), keepdims=True)
    d = (x - mu) ** 2
    s = jnp.sum(d, axis=(2, 3), keepdims=True)
    y = d / (4.0 * (s / n + e_lambda)) + 0.5
    return x * jax.nn.sigmoid(y)


if __name__ == "__main__":
    key = jax.random.PRNGKey(0)
    # NCHW, small shapes consistent with the module.
    x = jax.random.normal(key, (2, 4, 16, 16), dtype=jnp.float32)

    out = simam(x)
    out = jax.block_until_ready(out)

    ref = _simam_ref(x)
    assert out.shape == x.shape and out.dtype == x.dtype
    assert jnp.allclose(out, ref, atol=1e-5, rtol=1e-5), "mismatch vs reference"

    print("KERNEL_OK")
</pallas_src>

<mosaic_0001>
module attributes {stable_mosaic.version = 11 : i64} {
  func.func @_simam_kernel(%arg0: i32, %arg1: memref<8x256xf32, #tpu.memory_space<vmem>>, %arg2: memref<8x256xf32, #tpu.memory_space<vmem>>) attributes {dimension_semantics = [#tpu.dimension_semantics<parallel>], iteration_bounds = array<i64: 1>, scalar_prefetch = 0 : i64, scratch_operands = 0 : i64, tpu.core_type = #tpu.core_type<tc>, window_params = [{transform_indices = @transform_0, window_bounds = array<i64: 8, 256>}, {transform_indices = @transform_1, window_bounds = array<i64: 8, 256>}]} {
    %c0 = arith.constant 0 : index
    %c0_0 = arith.constant 0 : index
    %0 = vector.load %arg1[%c0, %c0_0] : memref<8x256xf32, #tpu.memory_space<vmem>>, vector<8x256xf32>
    %cst = arith.constant dense<0.000000e+00> : vector<8xf32>
    %1 = vector.multi_reduction <add>, %0, %cst [1] : vector<8x256xf32> to vector<8xf32>
    %2 = vector.shape_cast %1 : vector<8xf32> to vector<8x1xf32>
    %3 = arith.mulf %0, %0 : vector<8x256xf32>
    %cst_1 = arith.constant dense<0.000000e+00> : vector<8xf32>
    %4 = vector.multi_reduction <add>, %3, %cst_1 [1] : vector<8x256xf32> to vector<8xf32>
    %5 = vector.shape_cast %4 : vector<8xf32> to vector<8x1xf32>
    %cst_2 = arith.constant 3.906250e-03 : f32
    %6 = vector.broadcast %cst_2 : f32 to vector<8x1xf32>
    %7 = arith.mulf %2, %6 : vector<8x1xf32>
    %8 = arith.mulf %2, %7 : vector<8x1xf32>
    %9 = arith.subf %5, %8 : vector<8x1xf32>
    %cst_3 = arith.constant 0.0156862754 : f32
    %10 = vector.broadcast %cst_3 : f32 to vector<8x1xf32>
    %11 = arith.mulf %9, %10 : vector<8x1xf32>
    %cst_4 = arith.constant 4.000000e-04 : f32
    %12 = vector.broadcast %cst_4 : f32 to vector<8x1xf32>
    %13 = arith.addf %11, %12 : vector<8x1xf32>
    %14 = tpu.reciprocal %13 : vector<8x1xf32> -> vector<8x1xf32>
    %15 = vector.broadcast %7 : vector<8x1xf32> to vector<8x256xf32>
    %16 = arith.subf %0, %15 : vector<8x256xf32>
    %17 = arith.mulf %16, %16 : vector<8x256xf32>
    %18 = vector.broadcast %14 : vector<8x1xf32> to vector<8x256xf32>
    %19 = arith.mulf %17, %18 : vector<8x256xf32>
    %cst_5 = arith.constant 5.000000e-01 : f32
    %20 = vector.broadcast %cst_5 : f32 to vector<8x256xf32>
    %21 = arith.addf %19, %20 : vector<8x256xf32>
    %22 = arith.negf %21 : vector<8x256xf32>
    %23 = math.exp %22 : vector<8x256xf32>
    %cst_6 = arith.constant 1.000000e+00 : f32
    %24 = vector.broadcast %cst_6 : f32 to vector<8x256xf32>
    %25 = arith.addf %24, %23 : vector<8x256xf32>
    %26 = arith.divf %24, %25 : vector<8x256xf32>
    %27 = arith.mulf %0, %26 : vector<8x256xf32>
    %c0_7 = arith.constant 0 : index
    %c0_8 = arith.constant 0 : index
    %28 = vector.load %arg2[%c0_7, %c0_8] : memref<8x256xf32, #tpu.memory_space<vmem>>, vector<8x256xf32>
    tpu.vector_store %arg2[%c0_7, %c0_8], %27 {strides = array<i32>} : memref<8x256xf32, #tpu.memory_space<vmem>>, vector<8x256xf32>,
    return
  }
  func.func @transform_0(%arg0: i32) -> (i32, i32) {
    %c0_i32 = arith.constant 0 : i32
    %c0_i32_0 = arith.constant 0 : i32
    return %arg0, %c0_i32 : i32, i32
  }
  func.func @transform_1(%arg0: i32) -> (i32, i32) {
    %c0_i32 = arith.constant 0 : i32
    %c0_i32_0 = arith.constant 0 : i32
    return %arg0, %c0_i32 : i32, i32
  }
}

</mosaic_0001>

<bundles_post_ra>
// kernel: tpu_custom_call.1
= control target key start
LH: loop header
LB: loop body
LE: loop exit
PB: predicated region body
PF: predicated region fallthrough
CT: control target
= control target key end

     0   :  { %6 = vsyncpa [#allocation3], 0  ;;  %s152_s0 = inlined_call_operand.hbm [shape: f32[8,256], index: 0, kind: input, shape index: {}]   ;;  %s153_s1 = inlined_call_operand.hbm [shape: f32[8,256], index: 1, kind: output, shape index: {}]  }
   0x1   :  { %7 = vsyncpa [#allocation4], 0  ;;  %s134_s6 = smov [#allocation2]  }
   0x2   :  { %s14_s7 = sshll.u32 %s134_s6, 4  ;;  %s15_s7 = int_to_ptr.vmem [resolvable:$true] %s14_s7 }
   0x3   :  { %s98_s8 = scalar_lea.vmem %s15_s7, 256  ;;  %p103_p1 = scmp.lt.s32.totalorder %s15_s7, %s15_s7 }
   0x4   :  { %p99_p0 = scmp.ne.s32.totalorder %s15_s7, %s98_s8  ;;  %p104_p2 = scmp.lt.s32.totalorder %s98_s8, %s98_s8 }
   0x6   :  { %p105_p3 = por %p104_p2, %p103_p1 }
   0x8   :  { %p106_p4 = pnand %p105_p3, %p99_p0 }
   0xa   :  { %109 = shalt.err (!%p106_p4)
}
   0xb   :  { %17 = dma.hbm_to_vmem [thread:$0]  %s152_s0, 256, %s15_s7, [#allocation3]  }
   0xc   :  { %130 = dma.done.wait [#allocation3], 256  }
   0xd   :  { %131 = vsyncadd [#allocation3], 4294967040  ;;  %v21_v0 = vld [vmem:[#allocation2] sm:$0xff]  ;;  %v22_v1 = vld [vmem:[#allocation2 + $0x8] sm:$0xff]  ;;  %s135_s0 = smov [#allocation5]  }
   0xe   :  { %v23_v2 = vadd.f32 %v22_v1, %v21_v0  ;;  %v26_v3 = vmul.f32 %v21_v0, %v21_v0  ;;  %v27_v4 = vmul.f32 %v22_v1, %v22_v1  ;;  %s67_s11 = sshll.u32 %s135_s0, 4  ;;  %s68_s11 = int_to_ptr.vmem [resolvable:$true] %s67_s11 }
   0xf   :  { %s110_s12 = scalar_lea.vmem %s68_s11, 256  ;;  %p115_p6 = scmp.lt.s32.totalorder %s68_s11, %s68_s11 }
  0x10   :  { %24 = vadd.xlane.f32.xlu0 %v23_v2  ;;  %v28_v5 = vadd.f32 %v27_v4, %v26_v3  ;;  %p111_p5 = scmp.ne.s32.totalorder %s68_s11, %s110_s12  ;;  %p116_p7 = scmp.lt.s32.totalorder %s110_s12, %s110_s12 }
  0x12   :  { %p117_p8 = por %p116_p7, %p115_p6 }
  0x14   :  { %29 = vadd.xlane.f32.xlu0 %v28_v5  ;;  %p118_p9 = pnand %p117_p8, %p111_p5 }
  0x99   :  { %v25_v6 = vpop.xlane.xlu0 %24 }
  0x9a   :  { %v31_v7 = vmul.f32 0.00390625, %v25_v6 }
  0x9c   :  { %v32_v8 = vmul.f32 %v31_v7, %v25_v6  ;;  %v37_v13 = vsub.f32 %v21_v0, %v31_v7  ;;  %v38_v14 = vsub.f32 %v22_v1, %v31_v7 }
  0x9d   :  { %v30_v9 = vpop.xlane.xlu0 %29 }
  0x9e   :  { %v33_v10 = vsub.f32 %v30_v9, %v32_v8  ;;  %v39_v15 = vmul.f32 %v37_v13, %v37_v13  ;;  %v40_v16 = vmul.f32 %v38_v14, %v38_v14 }
  0xa0   :  { %v34_v11 = vmul.f32 0.015686275, %v33_v10 }
  0xa2   :  { %v35_v12 = vadd.f32 0.0004, %v34_v11 }
  0xa4   :  { %80 = vrcp.f32 %v35_v12 }
  0xb1   :  { %v81_v17 = vpop.eup %80 }
  0xb2   :  { %v41_v18 = vmul.f32 %v81_v17, %v39_v15  ;;  %v42_v19 = vmul.f32 %v81_v17, %v40_v16 }
  0xb4   :  { %v43_v20 = vadd.f32 0.5, %v41_v18  ;;  %v44_v21 = vadd.f32 0.5, %v42_v19 }
  0xb6   :  { %v76_v22 = vmul.f32 -1.442695, %v43_v20  ;;  %v77_v23 = vmul.f32 -1.442695, %v44_v21 }
  0xb8   :  { %82 = vpow2.f32 %v76_v22 }
  0xb9   :  { %84 = vpow2.f32 %v77_v23 }
  0xc5   :  { %v83_v24 = vpop.eup %82 }
  0xc6   :  { %v85_v25 = vpop.eup %84  ;;  %v51_v26 = vadd.f32 1.0, %v83_v24 }
  0xc7   :  { %v52_v27 = vadd.f32 1.0, %v85_v25 }
  0xc8   :  { %86 = vrcp.f32 %v51_v26 }
  0xc9   :  { %88 = vrcp.f32 %v52_v27 }
  0xd5   :  { %v87_v28 = vpop.eup %86 }
  0xd6   :  { %v89_v29 = vpop.eup %88  ;;  %v57_v30 = vmul.f32 %v87_v28, %v21_v0 }
  0xd7   :  { %v58_v31 = vmul.f32 %v89_v29, %v22_v1 }
  0xd8   :  { %59 = vst [vmem:[#allocation5] sm:$0xff] %v57_v30 }
  0xd9   :  { %60 = vst [vmem:[#allocation5 + $0x8] sm:$0xff] %v58_v31 }
  0xda   :  { %121 = shalt.err (!%p118_p9)
}
  0xdb   :  { %70 = dma.vmem_to_hbm [thread:$0]  %s68_s11, 256, %s153_s1, [#allocation4]  }
  0xdc   :  { %132 = dma.done.wait [#allocation4], 256  }
  0xdd   :  { %133 = vsyncadd [#allocation4], 4294967040 }
  0xde   :  { %74 = vsyncpa [#allocation3], 1 }
  0xdf   :  { %75 = vsyncpa [#allocation4], 1 }

</bundles_post_ra>
